<compile_context>
chip_gen: v7x
topology: tpu7x:2x2x1
jax: 0.10.0
libtpu: 0.0.40
codegen_flags: <defaults>
</compile_context>

<pallas_src>
import functools

import jax
import jax.numpy as jnp
from jax.experimental import pallas as pl
from jax.experimental.pallas import tpu as pltpu


# ----------------------------------------------------------------------------
# Pallas kernel: fused im2col + (W @ pixels) + bias + ReLU, one batch element
# ----------------------------------------------------------------------------
def _conv_engine_kernel(x_ref, w_ref, b_ref, out_ref, *, wp, m_out, ksize):
    """One batch element of Conv2d(kxk, pad=same, stride=1) + bias + ReLU.

    x_ref  : (1, C, Min)    bf16  channel-major, spatially padded & flattened
    w_ref  : (k*k, OC, C)   bf16  per-tap weight matrices
    b_ref  : (OC, 1)        f32   bias column
    out_ref: (1, OC, m_out) bf16  m_out = H*(W+2p); pixel axis is lane-dense

    Because the input is flattened over the padded spatial dims, tap (kh, kw)
    of the convolution is exactly the window x[:, off : off + m_out] with
    off = kh*wp + kw -- im2col never materializes; it is k*k shifted slices of
    one VMEM-resident tile feeding k*k accumulated MXU matmuls.
    """
    nt, oc, _ = w_ref.shape
    acc = jnp.zeros((oc, m_out), jnp.float32)
    for t in range(nt):
        kh, kw = divmod(t, ksize)
        off = kh * wp + kw                                    # static Python int
        tap = x_ref[0, :, pl.ds(off, m_out)]                  # (C, m_out) bf16
        acc = acc + jnp.dot(w_ref[t], tap,
                            preferred_element_type=jnp.float32)
    acc = acc + b_ref[...]                                    # (OC, 1) broadcast
    out_ref[0] = jnp.maximum(acc, 0.0).astype(out_ref.dtype)


# ----------------------------------------------------------------------------
# pallas_call wrapper
# ----------------------------------------------------------------------------
def _run_engine(x_flat, w_taps, b_col, *, H, W, ksize):
    """x_flat: (B, C, Min) bf16; w_taps: (k*k, OC, C) bf16; b_col: (OC,1) f32.

    Returns (B, OC, H*(W+2p)) bf16 -- flattened NCHW (with 2p garbage columns
    per row that the caller slices off)."""
    B, C, m_in = x_flat.shape
    nt, OC, _ = w_taps.shape
    p = ksize // 2
    wp = W + 2 * p
    m_out = H * wp

    kernel = functools.partial(_conv_engine_kernel, wp=wp, m_out=m_out,
                               ksize=ksize)

    cost = pl.CostEstimate(
        flops=2 * B * m_out * C * OC * nt,
        transcendentals=0,
        bytes_accessed=int(B * C * m_in * 2 + nt * OC * C * 2 + OC * 4
                           + B * OC * m_out * 2),
    )

    # Whole-image blocks, one grid step per batch element: fewest pipeline
    # steps on single-TC chips (v5e/v6e); "parallel" lets v7x's two
    # TensorCores take one batch element each.  Weight/bias blocks are
    # grid-invariant (constant index_map -> fetched once); they are only a few
    # hundred bytes, so pl.Buffered(1) single-buffering is not worth the risk.
    # TODO(synk): row-band the image (halo'd band via manual make_async_copy)
    # once H*W*C no longer fits comfortably in VMEM; at these shapes the whole
    # per-batch working set is < 32 KiB.
    return pl.pallas_call(
        kernel,
        out_shape=jax.ShapeDtypeStruct((B, OC, m_out), jnp.bfloat16),
        grid_spec=pltpu.PrefetchScalarGridSpec(
            num_scalar_prefetch=0,
            grid=(B,),
            in_specs=[
                pl.BlockSpec((1, C, m_in), lambda b: (b, 0, 0)),   # activation
                pl.BlockSpec((nt, OC, C), lambda b: (0, 0, 0)),    # weights
                pl.BlockSpec((OC, 1), lambda b: (0, 0)),           # bias
            ],
            out_specs=pl.BlockSpec((1, OC, m_out), lambda b: (b, 0, 0)),
        ),
        compiler_params=pltpu.CompilerParams(
            dimension_semantics=("parallel",),
            vmem_limit_bytes=32 * 1024 * 1024,
        ),
        cost_estimate=cost,
    )(x_flat, w_taps, b_col)


# ----------------------------------------------------------------------------
# Glue (plain JAX, jitted): channel-major padding/flattening, no transposes
# ----------------------------------------------------------------------------
def _engine_forward(x, w_taps, b_col, *, c_out, ksize, out_dtype):
    """NCHW f32 -> NCHW out_dtype; all layout work is channel-major, so there
    are no NHWC transposes anywhere on the hot path."""
    B, C, H, W = x.shape
    p = ksize // 2
    wp = W + 2 * p
    # Pad spatially (one extra bottom row so the last tap's shifted window
    # stays in bounds) and flatten the padded spatial dims per channel.
    xb = x.astype(jnp.bfloat16)
    xp = jnp.pad(xb, ((0, 0), (0, 0), (p, p + 1), (p, p)))
    x_flat = xp.reshape(B, C, (H + 2 * p + 1) * wp)
    y = _run_engine(x_flat, w_taps, b_col, H=H, W=W, ksize=ksize)  # (B,OC,H*wp)
    # Flattened-pixel axis -> (H, wp); columns [W, wp) are wrap-around garbage.
    y = y.reshape(B, c_out, H, wp)[:, :, :, :W]                    # NCHW already
    return y.astype(out_dtype)


# ----------------------------------------------------------------------------
# Synthetic "TensorRT engine": Conv2d(C_in -> C_out, 3x3, pad=1) + bias + ReLU
# ----------------------------------------------------------------------------
class TRTModule:
    """JAX/Pallas analogue of torch.fx.experimental.fx2trt.TRTModule.

    The opaque TensorRT engine is replaced by a deterministic synthetic
    conv+bias+relu network; forward() reproduces the binding / output-dtype
    semantics (single input binding -> single output binding).
    """

    def __init__(self, c_in=4, c_out=8, ksize=3,
                 input_names=None, output_names=None, fp16_output=False):
        self.input_names = input_names if input_names is not None else ["x"]
        self.output_names = output_names if output_names is not None else ["output"]
        self.fp16_output = fp16_output
        self.c_in, self.c_out, self.ksize = c_in, c_out, ksize

        # Deterministic parameter init (PyTorch conv weight layout: OIHW).
        kw = jax.random.PRNGKey(42)
        kw, kb = jax.random.split(kw)
        fan_in = c_in * ksize * ksize
        self.weight = (jax.random.normal(kw, (c_out, c_in, ksize, ksize),
                                         jnp.float32) / jnp.sqrt(fan_in))
        self.bias = jax.random.normal(kb, (c_out,), jnp.float32) * 0.1

        # Kernel-ready parameters: OIHW -> (kh, kw, OC, C) -> (k*k, OC, C), so
        # w_taps[kh*k + kw] is the (OC, C) matrix of tap (kh, kw).
        self._w_taps = jnp.transpose(self.weight, (2, 3, 0, 1)).reshape(
            ksize * ksize, c_out, c_in).astype(jnp.bfloat16)
        self._b_col = self.bias.reshape(c_out, 1).astype(jnp.float32)

        # The kernel stores bf16; the binding dtype is applied in the wrapper:
        # f32 by default, IEEE float16 when fp16_output=True (matching
        # torch_dtype_from_trt(trt.float16) binding semantics).
        out_dtype = jnp.float16 if fp16_output else jnp.float32
        self._forward_fn = jax.jit(functools.partial(
            _engine_forward, c_out=c_out, ksize=ksize, out_dtype=out_dtype))

    def forward(self, *inputs):
        # Mirror TRTModule.forward: single input binding -> single output binding.
        x = inputs[0]                                   # NCHW
        batch_size = x.shape[0]                         # noqa: F841 (spec parity)
        assert x.shape[1] == self.c_in
        y = self._forward_fn(x, self._w_taps, self._b_col)   # (B, OC, H, W)
        outputs = [y]
        if len(outputs) == 1:
            return outputs[0]
        return tuple(outputs)

    __call__ = forward


# ----------------------------------------------------------------------------
# main
# ----------------------------------------------------------------------------
if __name__ == "__main__":
    key = jax.random.PRNGKey(0)
    B, C, H, W = 2, 4, 16, 16
    x = jax.random.normal(key, (B, C, H, W), jnp.float32)

    mod = TRTModule(c_in=C, c_out=8, ksize=3,
                    input_names=["x"], output_names=["output"],
                    fp16_output=False)

    out = mod(x)
    out = jax.block_until_ready(out)

    # Sanity check against a pure-JAX reference conv + bias + relu (f32).
    ref = jax.lax.conv_general_dilated(
        x, mod.weight, window_strides=(1, 1), padding="SAME",
        dimension_numbers=("NCHW", "OIHW", "NCHW"))
    ref = jnp.maximum(ref + mod.bias.reshape(1, -1, 1, 1), 0.0)
    assert out.shape == (B, 8, H, W), out.shape
    assert out.dtype == jnp.float32, out.dtype
    # bf16 MXU inputs + bf16 kernel store -> loose tolerance.
    assert jnp.allclose(out, ref, rtol=2e-2, atol=2e-2), "mismatch vs reference"

    print("KERNEL_OK")
</pallas_src>

<mosaic_0001>
module attributes {stable_mosaic.version = 11 : i64} {
  func.func @_conv_engine_kernel(%arg0: i32, %arg1: memref<1x4x342xbf16, #tpu.memory_space<vmem>>, %arg2: memref<9x8x4xbf16, #tpu.memory_space<vmem>>, %arg3: memref<8x1xf32, #tpu.memory_space<vmem>>, %arg4: memref<1x8x288xbf16, #tpu.memory_space<vmem>>) attributes {dimension_semantics = [#tpu.dimension_semantics<parallel>], iteration_bounds = array<i64: 2>, scalar_prefetch = 0 : i64, scratch_operands = 0 : i64, tpu.core_type = #tpu.core_type<tc>, window_params = [{transform_indices = @transform_0, window_bounds = array<i64: 1, 4, 342>}, {pipeline_mode = #tpu.pipeline_mode<synchronous>, transform_indices = @transform_1, window_bounds = array<i64: 9, 8, 4>}, {pipeline_mode = #tpu.pipeline_mode<synchronous>, transform_indices = @transform_2, window_bounds = array<i64: 8, 1>}, {transform_indices = @transform_3, window_bounds = array<i64: 1, 8, 288>}]} {
    %cst = arith.constant 0.000000e+00 : f32
    %0 = vector.broadcast %cst : f32 to vector<8x288xf32>
    %c0 = arith.constant 0 : index
    %c0_0 = arith.constant 0 : index
    %c0_1 = arith.constant 0 : index
    %1 = vector.load %arg1[%c0, %c0_0, %c0_1] : memref<1x4x342xbf16, #tpu.memory_space<vmem>>, vector<1x4x288xbf16>
    %2 = vector.shape_cast %1 : vector<1x4x288xbf16> to vector<4x288xbf16>
    %c0_2 = arith.constant 0 : index
    %c0_3 = arith.constant 0 : index
    %c0_4 = arith.constant 0 : index
    %3 = vector.load %arg2[%c0_2, %c0_3, %c0_4] : memref<9x8x4xbf16, #tpu.memory_space<vmem>>, vector<1x8x4xbf16>
    %4 = vector.shape_cast %3 : vector<1x8x4xbf16> to vector<8x4xbf16>
    %cst_5 = arith.constant dense<0.000000e+00> : vector<8x288xf32>
    %5 = tpu.matmul %4, %2, %cst_5 {dimension_numbers = #tpu.dot_dimension_numbers<[1], [0], [0], [1], [0, 0, 1, 1], [], []>} : vector<8x4xbf16>, vector<4x288xbf16>, vector<8x288xf32> -> vector<8x288xf32>
    %6 = arith.addf %0, %5 : vector<8x288xf32>
    %c0_6 = arith.constant 0 : index
    %c0_7 = arith.constant 0 : index
    %c1 = arith.constant 1 : index
    %7 = vector.load %arg1[%c0_6, %c0_7, %c1] : memref<1x4x342xbf16, #tpu.memory_space<vmem>>, vector<1x4x288xbf16>
    %8 = vector.shape_cast %7 : vector<1x4x288xbf16> to vector<4x288xbf16>
    %c1_8 = arith.constant 1 : index
    %c0_9 = arith.constant 0 : index
    %c0_10 = arith.constant 0 : index
    %9 = vector.load %arg2[%c1_8, %c0_9, %c0_10] : memref<9x8x4xbf16, #tpu.memory_space<vmem>>, vector<1x8x4xbf16>
    %10 = vector.shape_cast %9 : vector<1x8x4xbf16> to vector<8x4xbf16>
    %cst_11 = arith.constant dense<0.000000e+00> : vector<8x288xf32>
    %11 = tpu.matmul %10, %8, %cst_11 {dimension_numbers = #tpu.dot_dimension_numbers<[1], [0], [0], [1], [0, 0, 1, 1], [], []>} : vector<8x4xbf16>, vector<4x288xbf16>, vector<8x288xf32> -> vector<8x288xf32>
    %12 = arith.addf %6, %11 : vector<8x288xf32>
    %c0_12 = arith.constant 0 : index
    %c0_13 = arith.constant 0 : index
    %c2 = arith.constant 2 : index
    %13 = vector.load %arg1[%c0_12, %c0_13, %c2] : memref<1x4x342xbf16, #tpu.memory_space<vmem>>, vector<1x4x288xbf16>
    %14 = vector.shape_cast %13 : vector<1x4x288xbf16> to vector<4x288xbf16>
    %c2_14 = arith.constant 2 : index
    %c0_15 = arith.constant 0 : index
    %c0_16 = arith.constant 0 : index
    %15 = vector.load %arg2[%c2_14, %c0_15, %c0_16] : memref<9x8x4xbf16, #tpu.memory_space<vmem>>, vector<1x8x4xbf16>
    %16 = vector.shape_cast %15 : vector<1x8x4xbf16> to vector<8x4xbf16>
    %cst_17 = arith.constant dense<0.000000e+00> : vector<8x288xf32>
    %17 = tpu.matmul %16, %14, %cst_17 {dimension_numbers = #tpu.dot_dimension_numbers<[1], [0], [0], [1], [0, 0, 1, 1], [], []>} : vector<8x4xbf16>, vector<4x288xbf16>, vector<8x288xf32> -> vector<8x288xf32>
    %18 = arith.addf %12, %17 : vector<8x288xf32>
    %c0_18 = arith.constant 0 : index
    %c0_19 = arith.constant 0 : index
    %c18 = arith.constant 18 : index
    %19 = vector.load %arg1[%c0_18, %c0_19, %c18] : memref<1x4x342xbf16, #tpu.memory_space<vmem>>, vector<1x4x288xbf16>
    %20 = vector.shape_cast %19 : vector<1x4x288xbf16> to vector<4x288xbf16>
    %c3 = arith.constant 3 : index
    %c0_20 = arith.constant 0 : index
    %c0_21 = arith.constant 0 : index
    %21 = vector.load %arg2[%c3, %c0_20, %c0_21] : memref<9x8x4xbf16, #tpu.memory_space<vmem>>, vector<1x8x4xbf16>
    %22 = vector.shape_cast %21 : vector<1x8x4xbf16> to vector<8x4xbf16>
    %cst_22 = arith.constant dense<0.000000e+00> : vector<8x288xf32>
    %23 = tpu.matmul %22, %20, %cst_22 {dimension_numbers = #tpu.dot_dimension_numbers<[1], [0], [0], [1], [0, 0, 1, 1], [], []>} : vector<8x4xbf16>, vector<4x288xbf16>, vector<8x288xf32> -> vector<8x288xf32>
    %24 = arith.addf %18, %23 : vector<8x288xf32>
    %c0_23 = arith.constant 0 : index
    %c0_24 = arith.constant 0 : index
    %c19 = arith.constant 19 : index
    %25 = vector.load %arg1[%c0_23, %c0_24, %c19] : memref<1x4x342xbf16, #tpu.memory_space<vmem>>, vector<1x4x288xbf16>
    %26 = vector.shape_cast %25 : vector<1x4x288xbf16> to vector<4x288xbf16>
    %c4 = arith.constant 4 : index
    %c0_25 = arith.constant 0 : index
    %c0_26 = arith.constant 0 : index
    %27 = vector.load %arg2[%c4, %c0_25, %c0_26] : memref<9x8x4xbf16, #tpu.memory_space<vmem>>, vector<1x8x4xbf16>
    %28 = vector.shape_cast %27 : vector<1x8x4xbf16> to vector<8x4xbf16>
    %cst_27 = arith.constant dense<0.000000e+00> : vector<8x288xf32>
    %29 = tpu.matmul %28, %26, %cst_27 {dimension_numbers = #tpu.dot_dimension_numbers<[1], [0], [0], [1], [0, 0, 1, 1], [], []>} : vector<8x4xbf16>, vector<4x288xbf16>, vector<8x288xf32> -> vector<8x288xf32>
    %30 = arith.addf %24, %29 : vector<8x288xf32>
    %c0_28 = arith.constant 0 : index
    %c0_29 = arith.constant 0 : index
    %c20 = arith.constant 20 : index
    %31 = vector.load %arg1[%c0_28, %c0_29, %c20] : memref<1x4x342xbf16, #tpu.memory_space<vmem>>, vector<1x4x288xbf16>
    %32 = vector.shape_cast %31 : vector<1x4x288xbf16> to vector<4x288xbf16>
    %c5 = arith.constant 5 : index
    %c0_30 = arith.constant 0 : index
    %c0_31 = arith.constant 0 : index
    %33 = vector.load %arg2[%c5, %c0_30, %c0_31] : memref<9x8x4xbf16, #tpu.memory_space<vmem>>, vector<1x8x4xbf16>
    %34 = vector.shape_cast %33 : vector<1x8x4xbf16> to vector<8x4xbf16>
    %cst_32 = arith.constant dense<0.000000e+00> : vector<8x288xf32>
    %35 = tpu.matmul %34, %32, %cst_32 {dimension_numbers = #tpu.dot_dimension_numbers<[1], [0], [0], [1], [0, 0, 1, 1], [], []>} : vector<8x4xbf16>, vector<4x288xbf16>, vector<8x288xf32> -> vector<8x288xf32>
    %36 = arith.addf %30, %35 : vector<8x288xf32>
    %c0_33 = arith.constant 0 : index
    %c0_34 = arith.constant 0 : index
    %c36 = arith.constant 36 : index
    %37 = vector.load %arg1[%c0_33, %c0_34, %c36] : memref<1x4x342xbf16, #tpu.memory_space<vmem>>, vector<1x4x288xbf16>
    %38 = vector.shape_cast %37 : vector<1x4x288xbf16> to vector<4x288xbf16>
    %c6 = arith.constant 6 : index
    %c0_35 = arith.constant 0 : index
    %c0_36 = arith.constant 0 : index
    %39 = vector.load %arg2[%c6, %c0_35, %c0_36] : memref<9x8x4xbf16, #tpu.memory_space<vmem>>, vector<1x8x4xbf16>
    %40 = vector.shape_cast %39 : vector<1x8x4xbf16> to vector<8x4xbf16>
    %cst_37 = arith.constant dense<0.000000e+00> : vector<8x288xf32>
    %41 = tpu.matmul %40, %38, %cst_37 {dimension_numbers = #tpu.dot_dimension_numbers<[1], [0], [0], [1], [0, 0, 1, 1], [], []>} : vector<8x4xbf16>, vector<4x288xbf16>, vector<8x288xf32> -> vector<8x288xf32>
    %42 = arith.addf %36, %41 : vector<8x288xf32>
    %c0_38 = arith.constant 0 : index
    %c0_39 = arith.constant 0 : index
    %c37 = arith.constant 37 : index
    %43 = vector.load %arg1[%c0_38, %c0_39, %c37] : memref<1x4x342xbf16, #tpu.memory_space<vmem>>, vector<1x4x288xbf16>
    %44 = vector.shape_cast %43 : vector<1x4x288xbf16> to vector<4x288xbf16>
    %c7 = arith.constant 7 : index
    %c0_40 = arith.constant 0 : index
    %c0_41 = arith.constant 0 : index
    %45 = vector.load %arg2[%c7, %c0_40, %c0_41] : memref<9x8x4xbf16, #tpu.memory_space<vmem>>, vector<1x8x4xbf16>
    %46 = vector.shape_cast %45 : vector<1x8x4xbf16> to vector<8x4xbf16>
    %cst_42 = arith.constant dense<0.000000e+00> : vector<8x288xf32>
    %47 = tpu.matmul %46, %44, %cst_42 {dimension_numbers = #tpu.dot_dimension_numbers<[1], [0], [0], [1], [0, 0, 1, 1], [], []>} : vector<8x4xbf16>, vector<4x288xbf16>, vector<8x288xf32> -> vector<8x288xf32>
    %48 = arith.addf %42, %47 : vector<8x288xf32>
    %c0_43 = arith.constant 0 : index
    %c0_44 = arith.constant 0 : index
    %c38 = arith.constant 38 : index
    %49 = vector.load %arg1[%c0_43, %c0_44, %c38] : memref<1x4x342xbf16, #tpu.memory_space<vmem>>, vector<1x4x288xbf16>
    %50 = vector.shape_cast %49 : vector<1x4x288xbf16> to vector<4x288xbf16>
    %c8 = arith.constant 8 : index
    %c0_45 = arith.constant 0 : index
    %c0_46 = arith.constant 0 : index
    %51 = vector.load %arg2[%c8, %c0_45, %c0_46] : memref<9x8x4xbf16, #tpu.memory_space<vmem>>, vector<1x8x4xbf16>
    %52 = vector.shape_cast %51 : vector<1x8x4xbf16> to vector<8x4xbf16>
    %cst_47 = arith.constant dense<0.000000e+00> : vector<8x288xf32>
    %53 = tpu.matmul %52, %50, %cst_47 {dimension_numbers = #tpu.dot_dimension_numbers<[1], [0], [0], [1], [0, 0, 1, 1], [], []>} : vector<8x4xbf16>, vector<4x288xbf16>, vector<8x288xf32> -> vector<8x288xf32>
    %54 = arith.addf %48, %53 : vector<8x288xf32>
    %c0_48 = arith.constant 0 : index
    %c0_49 = arith.constant 0 : index
    %55 = vector.load %arg3[%c0_48, %c0_49] : memref<8x1xf32, #tpu.memory_space<vmem>>, vector<8x1xf32>
    %56 = vector.broadcast %55 : vector<8x1xf32> to vector<8x288xf32>
    %57 = arith.addf %54, %56 : vector<8x288xf32>
    %cst_50 = arith.constant 0.000000e+00 : f32
    %58 = vector.broadcast %cst_50 : f32 to vector<8x288xf32>
    %59 = arith.maximumf %57, %58 : vector<8x288xf32>
    %60 = arith.truncf %59 : vector<8x288xf32> to vector<8x288xbf16>
    %c0_51 = arith.constant 0 : index
    %c0_52 = arith.constant 0 : index
    %c0_53 = arith.constant 0 : index
    %61 = vector.load %arg4[%c0_51, %c0_52, %c0_53] : memref<1x8x288xbf16, #tpu.memory_space<vmem>>, vector<1x8x288xbf16>
    %62 = vector.shape_cast %61 : vector<1x8x288xbf16> to vector<8x288xbf16>
    %63 = vector.shape_cast %60 : vector<8x288xbf16> to vector<1x8x288xbf16>
    tpu.vector_store %arg4[%c0_51, %c0_52, %c0_53], %63 {strides = array<i32>} : memref<1x8x288xbf16, #tpu.memory_space<vmem>>, vector<1x8x288xbf16>,
    return
  }
  func.func @transform_0(%arg0: i32) -> (i32, i32, i32) {
    %c0_i32 = arith.constant 0 : i32
    %c0_i32_0 = arith.constant 0 : i32
    %c0_i32_1 = arith.constant 0 : i32
    return %arg0, %c0_i32, %c0_i32_0 : i32, i32, i32
  }
  func.func @transform_1(%arg0: i32) -> (i32, i32, i32) {
    %c0_i32 = arith.constant 0 : i32
    %c0_i32_0 = arith.constant 0 : i32
    %c0_i32_1 = arith.constant 0 : i32
    %c0_i32_2 = arith.constant 0 : i32
    return %c0_i32, %c0_i32_0, %c0_i32_1 : i32, i32, i32
  }
  func.func @transform_2(%arg0: i32) -> (i32, i32) {
    %c0_i32 = arith.constant 0 : i32
    %c0_i32_0 = arith.constant 0 : i32
    %c0_i32_1 = arith.constant 0 : i32
    return %c0_i32, %c0_i32_0 : i32, i32
  }
  func.func @transform_3(%arg0: i32) -> (i32, i32, i32) {
    %c0_i32 = arith.constant 0 : i32
    %c0_i32_0 = arith.constant 0 : i32
    %c0_i32_1 = arith.constant 0 : i32
    return %arg0, %c0_i32, %c0_i32_0 : i32, i32, i32
  }
}

</mosaic_0001>

<bundles_post_ra>
// kernel: _engine_forward.1
= control target key start
LH: loop header
LB: loop body
LE: loop exit
PB: predicated region body
PF: predicated region fallthrough
CT: control target
= control target key end

     0   :  { %s1539_s12 = smov 0   ;;  %s1716_s0 = inlined_call_operand.vmem [shape: bf16[2,4,342], index: 0, kind: input, shape index: {}]   ;;  %s1717_s1 = inlined_call_operand.vmem [shape: bf16[9,8,4], index: 1, kind: input, shape index: {}]   ;;  %s1718_s2 = inlined_call_operand.vmem [shape: f32[8,1], index: 2, kind: input, shape index: {}]   ;;  %s1719_s3 = inlined_call_operand.vmem [shape: bf16[2,8,288], index: 3, kind: output, shape index: {}]  }
   0x1 LB: > { %s1348_s13 = sadd.s32 4294967295, %s1505_s12   ;;  %p1352_p0 = scmp.ge.s32.totalorder %s1505_s12, 1  ;;  %s1505_s12 = sphi %s1539_s12, %s13_s12  }
   0x2   : > { %p137_p1 = scmp.lt.s32.totalorder %s1505_s12, 3 }
   0x4   : > { %p138_p2 = pnand %p1352_p0, %p137_p1 }
   0x5   : > { %p161_p3 = scmp.lt.s32.totalorder (!%p138_p2), %s1348_s13, 1  ;;  %v181_v0 = vlaneseq (!%p138_p2)  ;;  %v1507_v1 = vmov (!%p138_p2), 1983009808   ;;  %v1508_v3 = vmov (!%p138_p2), 0.0   ;;  %vm1509_vm0 = vmmov (!%p138_p2), 0   ;;  %s1511_s18 = smov (!%p138_p2), 127  }
   0x6   : > { %141 = sbr.rel (%p138_p2) target bundleno = 430 (0x1ae), region = 32  ;;  %v179_v2 = vunpack.c.l.s4 (!%p138_p2), %v1507_v1  ;;  %1414 = vmatprep.subr.bf16.mxu1 (!%p138_p2), %v1508_v3  ;;  %1416 = vmatprep.mubr.msk.bf16.mxu1 (!%p138_p2), %vm1509_vm0, %v1508_v3  ;;  %v1510_v6 = vmov (!%p138_p2), 0   ;;  %s1512_s19 = smov (!%p138_p2), 126   ;;  %v1265_v48 = vld [vmem:[%s1718_s2] sm:$0xff] (!%p138_p2)  ;;  %vm206_vm1 = vcmask (!%p138_p2), 1041408   ;;  %vm199_vm2 = vcmask (!%p138_p2), 1039360  }
   0x7   : > { %v182_v4 = vshrl.u32 (!%p138_p2), %v181_v0, 7  ;;  %248 = vmatprep.mubr.bf16.mxu0 (!%p138_p2), %v1510_v6  ;;  %1490 = vset.pattern.permute.xlu0 (!%p138_p2), %v1510_v6  ;;  %s1513_s20 = smov (!%p138_p2), 110   ;;  %s1514_s21 = smov (!%p138_p2), 109   ;;  %v1355_v53 = vld [vmem:[%s1717_s1 + $0x4] sm:$0xf] (!%p138_p2)  ;;  %vm202_vm3 = vcmask (!%p138_p2), 31744  }
   0x8   : > { %v180_v5 = vunpack.c.0.s8 (!%p138_p2), %v179_v2  ;;  %s1515_s22 = smov (!%p138_p2), 108   ;;  %s1516_s23 = smov (!%p138_p2), 92   ;;  %vm416_vm4 = vcmask (!%p138_p2), 1031168   ;;  %v173_v63 = vld [vmem:[%s1717_s1] sm:$0xf] (!%p138_p2)  ;;  %vm541_vm5 = vcmask (!%p138_p2), 900096  }
   0x9   : > { %s1517_s24 = smov (!%p138_p2), 91   ;;  %s1518_s25 = smov (!%p138_p2), 90   ;;  %vm666_vm6 = vcmask (!%p138_p2), 891904   ;;  %vm791_vm7 = vcmask (!%p138_p2), 883712   ;;  %vm916_vm8 = vcmask (!%p138_p2), 752640   ;;  %vm1041_vm9 = vcmask (!%p138_p2), 744448  }
   0xa   : > { %v1555_v7 = vsub.s32 (!%p138_p2), %v180_v5, %v182_v4  ;;  %vm1166_vm10 = vcmask (!%p138_p2), 736256   ;;  %vm1291_vm11 = vcmask (!%p138_p2), 257024  }
   0xd   : > { %s1721_s13 = smov (!%p161_p3, %s1348_s13), 1 }
   0xe   : > { %s1468_s14 = smul.u32 6, %s1721_s13 }
  0x10   : > { %s1560_s17 = scalar_lea.vmem %s1716_s0, %s1468_s14 }
  0x11   : > { %v172_v8 = vld [vmem:[%s1560_s17] sm:$0x3f] }
  0x12   : > { %v1564_v9 = vrot.slane %v172_v8, %v1555_v7  ;;  %v177_v10 = vcombine.high %v172_v8, %v172_v8  ;;  %v390_v11 = vld [vmem:[%s1560_s17] sm:$0x3f] }
  0x13   : > { %v401_v14 = vrot.slane %v390_v11, %v1555_v7  ;;  %v394_v15 = vcombine.high %v390_v11, %v390_v11  ;;  %v515_v17 = vld [vmem:[%s1560_s17] sm:$0x3f] }
  0x14   : > { %193 = vrot.lane.b32.xlu0 %v1564_v9, %s1511_s18  ;;  %v1569_v12 = vrot.slane %v177_v10, %v1555_v7  ;;  %v1573_v13 = vcombine.high %v1564_v9, %v1564_v9  ;;  %v526_v19 = vrot.slane %v515_v17, %v1555_v7  ;;  %v519_v20 = vcombine.high %v515_v17, %v515_v17  ;;  %v640_v22 = vld [vmem:[%s1560_s17] sm:$0x3f]  ;;  %v1362_v10 = vld [vmem:[%s1717_s1 + $0x8] sm:$0xf] }
  0x15   : > { %v409_v16 = vcombine.high %v401_v14, %v401_v14  ;;  %v408_v18 = vrot.slane %v394_v15, %v1555_v7  ;;  %v651_v24 = vrot.slane %v640_v22, %v1555_v7  ;;  %v644_v25 = vcombine.high %v640_v22, %v640_v22  ;;  %v765_v27 = vld [vmem:[%s1560_s17] sm:$0x3f] }
  0x16   : > { %197 = vrot.lane.b32.xlu1 %v1569_v12, %s1511_s18  ;;  %v534_v21 = vcombine.high %v526_v19, %v526_v19  ;;  %v533_v23 = vrot.slane %v519_v20, %v1555_v7  ;;  %v776_v29 = vrot.slane %v765_v27, %v1555_v7  ;;  %v769_v30 = vcombine.high %v765_v27, %v765_v27  ;;  %v890_v32 = vld [vmem:[%s1560_s17] sm:$0x3f]  ;;  %v1370_v27 = vld [vmem:[%s1717_s1 + $0x10] sm:$0xf] }
  0x17   : > { %v659_v26 = vcombine.high %v651_v24, %v651_v24  ;;  %v658_v28 = vrot.slane %v644_v25, %v1555_v7  ;;  %v901_v34 = vrot.slane %v890_v32, %v1555_v7  ;;  %v894_v35 = vcombine.high %v890_v32, %v890_v32  ;;  %v1015_v37 = vld [vmem:[%s1560_s17] sm:$0x3f] }
  0x18   : > { %195 = vrot.lane.b32.xlu0 %v1573_v13, %s1511_s18  ;;  %v784_v31 = vcombine.high %v776_v29, %v776_v29  ;;  %v783_v33 = vrot.slane %v769_v30, %v1555_v7  ;;  %v1026_v39 = vrot.slane %v1015_v37, %v1555_v7  ;;  %v1019_v40 = vcombine.high %v1015_v37, %v1015_v37  ;;  %v1140_v42 = vld [vmem:[%s1560_s17] sm:$0x3f] }
  0x19   : > { %v909_v36 = vcombine.high %v901_v34, %v901_v34  ;;  %v908_v38 = vrot.slane %v894_v35, %v1555_v7  ;;  %v1151_v44 = vrot.slane %v1140_v42, %v1555_v7  ;;  %v1144_v45 = vcombine.high %v1140_v42, %v1140_v42  ;;  %v1374_v35 = vld [vmem:[%s1717_s1 + $0x14] sm:$0xf]  ;;  %v1378_v42 = vld [vmem:[%s1717_s1 + $0x18] sm:$0xf] }
  0x1a   : > { %410 = vrot.lane.b32.xlu1 %v401_v14, %s1512_s19  ;;  %v1034_v41 = vcombine.high %v1026_v39, %v1026_v39  ;;  %v1033_v43 = vrot.slane %v1019_v40, %v1555_v7  ;;  %v307_v56 = vsel %vm206_vm1, %v1569_v12, 0  ;;  %v301_v59 = vsel %vm206_vm1, %v1564_v9, 0 }
  0x1b   : > { %v1159_v46 = vcombine.high %v1151_v44, %v1151_v44  ;;  %v1158_v47 = vrot.slane %v1144_v45, %v1555_v7 }
  0x1c   : > { %412 = vrot.lane.b32.xlu0 %v409_v16, %s1512_s19 }
  0x1e   : > { %414 = vrot.lane.b32.xlu1 %v408_v18, %s1512_s19 }
  0x20   : > { %535 = vrot.lane.b32.xlu0 %v526_v19, %s1513_s20  ;;  %v1366_v19 = vld [vmem:[%s1717_s1 + $0xc] sm:$0xf] }
  0x22   : > { %537 = vrot.lane.b32.xlu1 %v534_v21, %s1513_s20 }
  0x24   : > { %539 = vrot.lane.b32.xlu0 %v533_v23, %s1513_s20 }
  0x26   : > { %660 = vrot.lane.b32.xlu1 %v651_v24, %s1514_s21 }
  0x28   : > { %662 = vrot.lane.b32.xlu0 %v659_v26, %s1514_s21 }
  0x2a   : > { %664 = vrot.lane.b32.xlu1 %v658_v28, %s1514_s21  ;;  %s1469_s21 = smul.u32 12, %s1721_s13 }
  0x2c   : > { %785 = vrot.lane.b32.xlu0 %v776_v29, %s1515_s22 }
  0x2e   : > { %787 = vrot.lane.b32.xlu1 %v784_v31, %s1515_s22 }
  0x30   : > { %789 = vrot.lane.b32.xlu0 %v783_v33, %s1515_s22 }
  0x32   : > { %910 = vrot.lane.b32.xlu1 %v901_v34, %s1516_s23 }
  0x34   : > { %912 = vrot.lane.b32.xlu0 %v909_v36, %s1516_s23 }
  0x36   : > { %914 = vrot.lane.b32.xlu1 %v908_v38, %s1516_s23 }
  0x38   : > { %1035 = vrot.lane.b32.xlu0 %v1026_v39, %s1517_s24 }
  0x3a   : > { %1037 = vrot.lane.b32.xlu1 %v1034_v41, %s1517_s24 }
  0x3c   : > { %1039 = vrot.lane.b32.xlu0 %v1033_v43, %s1517_s24  ;;  %s170_s24 = scalar_lea.vmem %s1719_s3, %s1469_s21 }
  0x3e   : > { %1160 = vrot.lane.b32.xlu1 %v1151_v44, %s1518_s25 }
  0x40   : > { %1162 = vrot.lane.b32.xlu0 %v1159_v46, %s1518_s25 }
  0x42   : > { %1164 = vrot.lane.b32.xlu1 %v1158_v47, %s1518_s25 }
  0x44   : > { %1268 = vperm.xlu0 %1490, %v1265_v48  }
  0x86   : > { %v194_v49 = vpop.permute.xlu0 %193 }
  0x88   : > { %v198_v50 = vpop.permute.xlu1 %197 }
  0x89   : > { %v214_v51 = vsel %vm206_vm1, %v198_v50, 0 }
  0x8a   : > { %v196_v52 = vpop.permute.xlu0 %195  ;;  %1415 = vmatpush3.bf16.msra.mxu1 %v214_v51 }
  0x8b   : > { %v201_v54 = vsel %vm199_vm2, %v196_v52, %v198_v50  ;;  %v200_v55 = vsel %vm199_vm2, %v194_v49, %v196_v52  ;;  %1420 = vmatprep.subr.bf16.mxu1 %v1508_v3  ;;  %v1382_v49 = vld [vmem:[%s1717_s1 + $0x1c] sm:$0xf] }
  0x8c   : > { %1356 = vmatprep.subr.msk.bf16.mxu0 %vm206_vm1, %v201_v54  ;;  %v208_v57 = vsel %vm206_vm1, %v200_v55, 0  ;;  %v411_v58 = vpop.permute.xlu1 %410 }
  0x8d   : > { %217 = vmatpush1.bf16.msra.mxu0 %v208_v57  ;;  %1417 = vmatmul.mubr.msk.bf16.vlgmr.msra.gmra.mrb[0].mxu1 %vm202_vm3, %v1355_v53 }
  0x8e   : > { %1359 = vmatprep.subr.msk.bf16.mxu0 %vm206_vm1, %v1573_v13  ;;  %v413_v60 = vpop.permute.xlu0 %412  ;;  %1421 = vmatpush3.bf16.msra.mxu1 %v307_v56 }
  0x8f   : > { %1422 = vmatprep.mubr.msk.bf16.mxu1 %vm1509_vm0, %v1508_v3  ;;  %1426 = vmatprep.subr.bf16.mxu1 %v1508_v3  ;;  %v417_v1 = vsel %vm416_vm4, %v411_v58, %v413_v60 }
  0x90   : > { %1357 = vmatmul.mubr.msk.bf16.vlgmr.msra.gmra.mrb[0].mxu0 %vm202_vm3, %v1355_v53  ;;  %v415_v61 = vpop.permute.xlu1 %414  ;;  %v423_v5 = vsel %vm206_vm1, %v417_v1, 0  ;;  %v1386_v53 = vld [vmem:[%s1717_s1 + $0x20] sm:$0xf] }
  0x91   : > { %310 = vmatpush1.bf16.msra.mxu0 %v301_v59  ;;  %v418_v62 = vsel %vm416_vm4, %v413_v60, %v415_v61  ;;  %341 = vmatprep.mubr.bf16.mxu0 %v1510_v6  ;;  %v429_v2 = vsel %vm206_vm1, %v415_v61, 0 }
  0x92   : > { %1363 = vmatprep.subr.msk.bf16.mxu0 %vm206_vm1, %v418_v62  ;;  %v536_v0 = vpop.permute.xlu0 %535 }
  0x94   : > { %v538_v4 = vpop.permute.xlu1 %537 }
  0x95   : > { %1423 = vmatmul.mubr.msk.bf16.vlgmr.msra.gmra.mrb[4].mxu1 %vm202_vm3, %v173_v63  ;;  %v542_v12 = vsel %vm541_vm5, %v536_v0, %v538_v4 }
  0x96   : > { %1427 = vmatpush3.bf16.msra.mxu1 %v429_v2  ;;  %1428 = vmatprep.mubr.msk.bf16.mxu1 %vm1509_vm0, %v1508_v3  ;;  %v540_v7 = vpop.permute.xlu0 %539  ;;  %v548_v15 = vsel %vm206_vm1, %v542_v12, 0 }
  0x97   : > { %v543_v8 = vsel %vm541_vm5, %v538_v4, %v540_v7  ;;  %1432 = vmatprep.subr.bf16.mxu1 %v1508_v3  ;;  %v554_v13 = vsel %vm206_vm1, %v540_v7, 0 }
  0x98   : > { %1360 = vmatmul.mubr.msk.bf16.vlgmr.msra.gmra.mrb[4].mxu0 %vm202_vm3, %v173_v63  ;;  %v661_v9 = vpop.permute.xlu1 %660 }
  0x99   : > { %432 = vmatpush1.bf16.msra.mxu0 %v423_v5  ;;  %463 = vmatprep.mubr.bf16.mxu0 %v1510_v6 }
  0x9a   : > { %1367 = vmatprep.subr.msk.bf16.mxu0 %vm206_vm1, %v543_v8  ;;  %v663_v11 = vpop.permute.xlu0 %662 }
  0x9b   : > { %v667_v20 = vsel %vm666_vm6, %v661_v9, %v663_v11 }
  0x9c   : > { %v665_v14 = vpop.permute.xlu1 %664  ;;  %v673_v23 = vsel %vm206_vm1, %v667_v20, 0 }
  0x9d   : > { %1429 = vmatmul.mubr.msk.bf16.vlgmr.msra.gmra.mrb[8].mxu1 %vm202_vm3, %v1362_v10  ;;  %v668_v17 = vsel %vm666_vm6, %v663_v11, %v665_v14  ;;  %v679_v21 = vsel %vm206_vm1, %v665_v14, 0 }
  0x9e   : > { %1433 = vmatpush3.bf16.msra.mxu1 %v554_v13  ;;  %1434 = vmatprep.mubr.msk.bf16.mxu1 %vm1509_vm0, %v1508_v3  ;;  %v786_v16 = vpop.permute.xlu0 %785 }
  0x9f   : > { %1438 = vmatprep.subr.bf16.mxu1 %v1508_v3 }
  0xa0   : > { %1364 = vmatmul.mubr.msk.bf16.vlgmr.msra.gmra.mrb[8].mxu0 %vm202_vm3, %v1362_v10  ;;  %v788_v18 = vpop.permute.xlu1 %787 }
  0xa1   : > { %557 = vmatpush1.bf16.msra.mxu0 %v548_v15  ;;  %588 = vmatprep.mubr.bf16.mxu0 %v1510_v6  ;;  %v792_v28 = vsel %vm791_vm7, %v786_v16, %v788_v18 }
  0xa2   : > { %1371 = vmatprep.subr.msk.bf16.mxu0 %vm206_vm1, %v668_v17  ;;  %v790_v22 = vpop.permute.xlu0 %789  ;;  %v798_v31 = vsel %vm206_vm1, %v792_v28, 0 }
  0xa3   : > { %v793_v25 = vsel %vm791_vm7, %v788_v18, %v790_v22  ;;  %v804_v29 = vsel %vm206_vm1, %v790_v22, 0 }
  0xa4   : > { %v911_v24 = vpop.permute.xlu1 %910 }
  0xa5   : > { %1435 = vmatmul.mubr.msk.bf16.vlgmr.msra.gmra.mrb[12].mxu1 %vm202_vm3, %v1366_v19 }
  0xa6   : > { %1439 = vmatpush3.bf16.msra.mxu1 %v679_v21  ;;  %1440 = vmatprep.mubr.msk.bf16.mxu1 %vm1509_vm0, %v1508_v3  ;;  %v913_v26 = vpop.permute.xlu0 %912 }
  0xa7   : > { %1444 = vmatprep.subr.bf16.mxu1 %v1508_v3  ;;  %v917_v36 = vsel %vm916_vm8, %v911_v24, %v913_v26 }
  0xa8   : > { %1368 = vmatmul.mubr.msk.bf16.vlgmr.msra.gmra.mrb[12].mxu0 %vm202_vm3, %v1366_v19  ;;  %v915_v30 = vpop.permute.xlu1 %914  ;;  %v923_v39 = vsel %vm206_vm1, %v917_v36, 0 }
  0xa9   : > { %682 = vmatpush1.bf16.msra.mxu0 %v673_v23  ;;  %713 = vmatprep.mubr.bf16.mxu0 %v1510_v6  ;;  %v918_v33 = vsel %vm916_vm8, %v913_v26, %v915_v30  ;;  %v929_v37 = vsel %vm206_vm1, %v915_v30, 0 }
  0xaa   : > { %1375 = vmatprep.subr.msk.bf16.mxu0 %vm206_vm1, %v793_v25  ;;  %v1036_v32 = vpop.permute.xlu0 %1035 }
  0xac   : > { %v1038_v34 = vpop.permute.xlu1 %1037 }
  0xad   : > { %1441 = vmatmul.mubr.msk.bf16.vlgmr.msra.gmra.mrb[16].mxu1 %vm202_vm3, %v1370_v27  ;;  %v1042_v43 = vsel %vm1041_vm9, %v1036_v32, %v1038_v34 }
  0xae   : > { %1445 = vmatpush3.bf16.msra.mxu1 %v804_v29  ;;  %1446 = vmatprep.mubr.msk.bf16.mxu1 %vm1509_vm0, %v1508_v3  ;;  %v1040_v38 = vpop.permute.xlu0 %1039  ;;  %v1048_v47 = vsel %vm206_vm1, %v1042_v43, 0 }
  0xaf   : > { %1450 = vmatprep.subr.bf16.mxu1 %v1508_v3  ;;  %v1043_v41 = vsel %vm1041_vm9, %v1038_v34, %v1040_v38  ;;  %v1054_v44 = vsel %vm206_vm1, %v1040_v38, 0 }
  0xb0   : > { %1372 = vmatmul.mubr.msk.bf16.vlgmr.msra.gmra.mrb[16].mxu0 %vm202_vm3, %v1370_v27  ;;  %v1161_v40 = vpop.permute.xlu1 %1160 }
  0xb1   : > { %807 = vmatpush1.bf16.msra.mxu0 %v798_v31  ;;  %838 = vmatprep.mubr.bf16.mxu0 %v1510_v6 }
  0xb2   : > { %1379 = vmatprep.subr.msk.bf16.mxu0 %vm206_vm1, %v918_v33  ;;  %v1163_v45 = vpop.permute.xlu0 %1162 }
  0xb3   : > { %v1167_v50 = vsel %vm1166_vm10, %v1161_v40, %v1163_v45 }
  0xb4   : > { %v1165_v46 = vpop.permute.xlu1 %1164  ;;  %v1173_v52 = vsel %vm206_vm1, %v1167_v50, 0 }
  0xb5   : > { %1447 = vmatmul.mubr.msk.bf16.vlgmr.msra.gmra.mrb[20].mxu1 %vm202_vm3, %v1374_v35  ;;  %v1168_v48 = vsel %vm1166_vm10, %v1163_v45, %v1165_v46  ;;  %v1179_v51 = vsel %vm206_vm1, %v1165_v46, 0 }
  0xb6   : > { %1451 = vmatpush3.bf16.msra.mxu1 %v929_v37  ;;  %1452 = vmatprep.mubr.msk.bf16.mxu1 %vm1509_vm0, %v1508_v3 }
  0xb7   : > { %1456 = vmatprep.subr.bf16.mxu1 %v1508_v3 }
  0xb8   : > { %1376 = vmatmul.mubr.msk.bf16.vlgmr.msra.gmra.mrb[20].mxu0 %vm202_vm3, %v1374_v35 }
  0xb9   : > { %932 = vmatpush1.bf16.msra.mxu0 %v923_v39  ;;  %963 = vmatprep.mubr.bf16.mxu0 %v1510_v6 }
  0xba   : > { %1383 = vmatprep.subr.msk.bf16.mxu0 %vm206_vm1, %v1043_v41 }
  0xbd   : > { %1453 = vmatmul.mubr.msk.bf16.vlgmr.msra.gmra.mrb[24].mxu1 %vm202_vm3, %v1378_v42 }
  0xbe   : > { %1457 = vmatpush3.bf16.msra.mxu1 %v1054_v44  ;;  %1458 = vmatprep.mubr.msk.bf16.mxu1 %vm1509_vm0, %v1508_v3 }
  0xbf   : > { %1462 = vmatprep.subr.bf16.mxu1 %v1508_v3 }
  0xc0   : > { %1380 = vmatmul.mubr.msk.bf16.vlgmr.msra.gmra.mrb[24].mxu0 %vm202_vm3, %v1378_v42 }
  0xc1   : > { %1057 = vmatpush1.bf16.msra.mxu0 %v1048_v47  ;;  %1088 = vmatprep.mubr.bf16.mxu0 %v1510_v6 }
  0xc2   : > { %1387 = vmatprep.subr.msk.bf16.mxu0 %vm206_vm1, %v1168_v48 }
  0xc5   : > { %1459 = vmatmul.mubr.msk.bf16.vlgmr.msra.gmra.mrb[28].mxu1 %vm202_vm3, %v1382_v49 }
  0xc6   : > { %1463 = vmatpush3.bf16.msra.mxu1 %v1179_v51  ;;  %1464 = vmatprep.mubr.msk.bf16.mxu1 %vm1509_vm0, %v1508_v3 }
  0xc8   : > { %1384 = vmatmul.mubr.msk.bf16.vlgmr.msra.gmra.mrb[28].mxu0 %vm202_vm3, %v1382_v49 }
  0xc9   : > { %1182 = vmatpush1.bf16.msra.mxu0 %v1173_v52  ;;  %1213 = vmatprep.mubr.bf16.mxu0 %v1510_v6 }
  0xcd   : > { %1465 = vmatmul.mubr.msk.bf16.vlgmr.msra.gmra.mrb[32].mxu1 %vm202_vm3, %v1386_v53 }
  0xd0   : > { %1388 = vmatmul.mubr.msk.bf16.vlgmr.msra.gmra.mrb[32].mxu0 %vm202_vm3, %v1386_v53 }
 0x160   : > { %v291_v54 = vpop.f32.mrb[0].mxu1 }
 0x161   : > { %v1418_v55 = vpop.f32.mrb[1].mxu1 }
 0x162   : > { %v294_v56 = vpop.f32.mrb[2].mxu1 }
 0x163   : > { %v250_v57 = vpop.f32.mrb[0].mxu0  ;;  %v1419_v58 = vpop.f32.mrb[3].mxu1 }
 0x164   : > { %v252_v59 = vpop.f32.mrb[1].mxu0 }
 0x165   : > { %v254_v3 = vpop.f32.mrb[2].mxu0 }
 0x166   : > { %v255_v60 = vpop.f32.mrb[3].mxu0 }
 0x168   : > { %v384_v61 = vpop.f32.mrb[4].mxu1 }
 0x169   : > { %v385_v62 = vadd.f32 %v384_v61, %v291_v54  ;;  %v1424_v63 = vpop.f32.mrb[5].mxu1 }
 0x16a   : > { %v387_v6 = vpop.f32.mrb[6].mxu1 }
 0x16b   : > { %v343_v0 = vpop.f32.mrb[4].mxu0  ;;  %v1425_v1 = vpop.f32.mrb[7].mxu1 }
 0x16c   : > { %v344_v2 = vadd.f32 %v343_v0, %v250_v57  ;;  %v345_v4 = vpop.f32.mrb[5].mxu0 }
 0x16d   : > { %v346_v5 = vadd.f32 %v345_v4, %v252_v59  ;;  %v347_v7 = vpop.f32.mrb[6].mxu0 }
 0x16e   : > { %v348_v8 = vpop.f32.mrb[7].mxu0 }
 0x170   : > { %v506_v9 = vpop.f32.mrb[8].mxu1 }
 0x171   : > { %v514_v10 = vadd.f32 %v506_v9, %v385_v62  ;;  %v1430_v11 = vpop.f32.mrb[9].mxu1 }
 0x172   : > { %v509_v12 = vpop.f32.mrb[10].mxu1 }
 0x173   : > { %v465_v13 = vpop.f32.mrb[8].mxu0  ;;  %v1431_v14 = vpop.f32.mrb[11].mxu1 }
 0x174   : > { %v512_v15 = vadd.f32 %v465_v13, %v344_v2  ;;  %v467_v16 = vpop.f32.mrb[9].mxu0  ;;  %v1269_v12 = vpop.permute.xlu0 %1268 }
 0x175   : > { %v513_v17 = vadd.f32 %v467_v16, %v346_v5  ;;  %v469_v18 = vpop.f32.mrb[10].mxu0 }
 0x176   : > { %v470_v19 = vpop.f32.mrb[11].mxu0 }
 0x178   : > { %v631_v20 = vpop.f32.mrb[12].mxu1 }
 0x179   : > { %v639_v21 = vadd.f32 %v631_v20, %v514_v10  ;;  %v1436_v22 = vpop.f32.mrb[13].mxu1 }
 0x17a   : > { %v634_v23 = vpop.f32.mrb[14].mxu1 }
 0x17b   : > { %v590_v24 = vpop.f32.mrb[12].mxu0  ;;  %v1437_v25 = vpop.f32.mrb[15].mxu1 }
 0x17c   : > { %v637_v26 = vadd.f32 %v590_v24, %v512_v15  ;;  %v592_v27 = vpop.f32.mrb[13].mxu0 }
 0x17d   : > { %v638_v28 = vadd.f32 %v592_v27, %v513_v17  ;;  %v594_v29 = vpop.f32.mrb[14].mxu0 }
 0x17e   : > { %v595_v30 = vpop.f32.mrb[15].mxu0 }
 0x180   : > { %v756_v31 = vpop.f32.mrb[16].mxu1 }
 0x181   : > { %v764_v32 = vadd.f32 %v756_v31, %v639_v21  ;;  %v1442_v33 = vpop.f32.mrb[17].mxu1 }
 0x182   : > { %v759_v34 = vpop.f32.mrb[18].mxu1 }
 0x183   : > { %v715_v35 = vpop.f32.mrb[16].mxu0  ;;  %v1443_v36 = vpop.f32.mrb[19].mxu1 }
 0x184   : > { %v762_v37 = vadd.f32 %v715_v35, %v637_v26  ;;  %v717_v38 = vpop.f32.mrb[17].mxu0 }
 0x185   : > { %v763_v39 = vadd.f32 %v717_v38, %v638_v28  ;;  %v719_v40 = vpop.f32.mrb[18].mxu0 }
 0x186   : > { %v720_v41 = vpop.f32.mrb[19].mxu0 }
 0x188   : > { %v881_v42 = vpop.f32.mrb[20].mxu1 }
 0x189   : > { %v889_v43 = vadd.f32 %v881_v42, %v764_v32  ;;  %v1448_v44 = vpop.f32.mrb[21].mxu1 }
 0x18a   : > { %v884_v45 = vpop.f32.mrb[22].mxu1 }
 0x18b   : > { %v840_v46 = vpop.f32.mrb[20].mxu0  ;;  %v1449_v47 = vpop.f32.mrb[23].mxu1 }
 0x18c   : > { %v887_v48 = vadd.f32 %v840_v46, %v762_v37  ;;  %v842_v49 = vpop.f32.mrb[21].mxu0 }
 0x18d   : > { %v888_v50 = vadd.f32 %v842_v49, %v763_v39  ;;  %v844_v51 = vpop.f32.mrb[22].mxu0 }
 0x18e   : > { %v845_v52 = vpop.f32.mrb[23].mxu0 }
 0x190   : > { %v1006_v53 = vpop.f32.mrb[24].mxu1 }
 0x191   : > { %v1014_v54 = vadd.f32 %v1006_v53, %v889_v43  ;;  %v1454_v55 = vpop.f32.mrb[25].mxu1 }
 0x192   : > { %v1009_v56 = vpop.f32.mrb[26].mxu1 }
 0x193   : > { %v965_v57 = vpop.f32.mrb[24].mxu0  ;;  %v1455_v58 = vpop.f32.mrb[27].mxu1 }
 0x194   : > { %v1012_v59 = vadd.f32 %v965_v57, %v887_v48  ;;  %v967_v3 = vpop.f32.mrb[25].mxu0 }
 0x195   : > { %v1013_v60 = vadd.f32 %v967_v3, %v888_v50  ;;  %v969_v61 = vpop.f32.mrb[26].mxu0 }
 0x196   : > { %v970_v62 = vpop.f32.mrb[27].mxu0 }
 0x198   : > { %v1131_v63 = vpop.f32.mrb[28].mxu1 }
 0x199   : > { %v1139_v6 = vadd.f32 %v1131_v63, %v1014_v54  ;;  %v1460_v0 = vpop.f32.mrb[29].mxu1 }
 0x19a   : > { %v1134_v1 = vpop.f32.mrb[30].mxu1 }
 0x19b   : > { %v1090_v2 = vpop.f32.mrb[28].mxu0  ;;  %v1461_v4 = vpop.f32.mrb[31].mxu1 }
 0x19c   : > { %v1137_v5 = vadd.f32 %v1090_v2, %v1012_v59  ;;  %v1092_v7 = vpop.f32.mrb[29].mxu0 }
 0x19d   : > { %v1138_v8 = vadd.f32 %v1092_v7, %v1013_v60  ;;  %v1094_v9 = vpop.f32.mrb[30].mxu0 }
 0x19e   : > { %v1095_v10 = vpop.f32.mrb[31].mxu0 }
 0x1a0   : > { %v1256_v11 = vpop.f32.mrb[32].mxu1 }
 0x1a1   : > { %v1264_v13 = vadd.f32 %v1256_v11, %v1139_v6  ;;  %v1466_v14 = vpop.f32.mrb[33].mxu1 }
 0x1a2   : > { %v1259_v15 = vpop.f32.mrb[34].mxu1 }
 0x1a3   : > { %v1273_v16 = vadd.f32 %v1269_v12, %v1264_v13  ;;  %v1215_v17 = vpop.f32.mrb[32].mxu0  ;;  %v1467_v18 = vpop.f32.mrb[35].mxu1 }
 0x1a4   : > { %v1262_v19 = vadd.f32 %v1215_v17, %v1137_v5  ;;  %v1217_v20 = vpop.f32.mrb[33].mxu0 }
 0x1a5   : > { %v1276_v21 = vmax.f32 %v1273_v16, 0.0  ;;  %v1263_v22 = vadd.f32 %v1217_v20, %v1138_v8  ;;  %v1219_v23 = vpop.f32.mrb[34].mxu0 }
 0x1a6   : > { %v1271_v24 = vadd.f32 %v1269_v12, %v1262_v19  ;;  %v1220_v25 = vpop.f32.mrb[35].mxu0 }
 0x1a7   : > { %v1395_v26 = vpack.c.bf16 %v1276_v21, %v1276_v21  ;;  %v1272_v27 = vadd.f32 %v1269_v12, %v1263_v22 }
 0x1a8   : > { %v1274_v28 = vmax.f32 %v1271_v24, 0.0 }
 0x1a9   : > { %1292 = vst.msk [vmem:[%s170_s24 + $0x8] sm:$0xf] %vm1291_vm11, %v1395_v26  ;;  %v1275_v29 = vmax.f32 %v1272_v27, 0.0 }
 0x1ab   : > { %v1394_v30 = vpack.c.bf16 %v1275_v29, %v1274_v28 }
 0x1ad   : > { %1290 = vst [vmem:[%s170_s24] sm:$0xff] %v1394_v30 }
 0x1ae PF: > { %s13_s12 = sadd.s32 1, %s1505_s12  }
 0x1af   : > { %p10_p4 = scmp.ge.s32.totalorder %s13_s12, 4  }
 0x1b1   :  { %12 = sbr.rel (!%p10_p4) target bundleno = 1 (0x1), region = 70 }

</bundles_post_ra>
